<compile_context>
chip_gen: v7x
topology: tpu7x:2x2x1
jax: 0.10.0
libtpu: 0.0.40
codegen_flags: <defaults>
</compile_context>

<pallas_src>
import math

import jax
import jax.numpy as jnp
from jax import lax
from jax.experimental import pallas as pl
from jax.experimental.pallas import tpu as pltpu


def _round_up(a: int, m: int) -> int:
    return (a + m - 1) // m * m


# --------------------------------------------------------------------------
# Prologue: read x once, emit attention column + attention-scaled bf16 x.
# --------------------------------------------------------------------------
def _scale_prologue_kernel(x_ref, v_ref, xs_ref, attn_ref):
    """Grid = (N tiles,).

    x_ref   : (TN, Dp) f32   node features for this N tile
    v_ref   : (1,  Dp) f32   attention vector (row layout)
    xs_ref  : (TN, Dp) bf16  attention-scaled features (w * x)
    attn_ref: (TN, 1)  f32   per-node attention weights (written once)
    """
    x = x_ref[...]                                   # (TN, Dp) f32
    v = v_ref[...]                                   # (1,  Dp) f32
    # w[t] = <x[t, :], attn_vector> — VPU multiply + lane reduce (no M=1 MXU op).
    w = jnp.sum(x * v, axis=-1, keepdims=True)       # (TN, 1) f32
    attn_ref[...] = w
    xs_ref[...] = (x * w).astype(xs_ref.dtype)       # (TN, Dp) bf16


# --------------------------------------------------------------------------
# Main matmul: out = sgs @ xs   (sgs int8 -> bf16 in-kernel, f32 accumulation)
# --------------------------------------------------------------------------
def _sgs_matmul_stream_kernel(sgs_ref, xs_ref, out_ref):
    """Grid = (B tiles, N tiles); N (last axis) is the reduction axis.

    sgs_ref : (TB, TN) int8   sub-graph incidence tile
    xs_ref  : (TN, Dp) bf16   attention-scaled features tile
    out_ref : (TB, Dp) f32    accumulated directly (resident across n)
    """
    n = pl.program_id(1)

    @pl.when(n == 0)
    def _init():
        out_ref[...] = jnp.zeros_like(out_ref)

    out_ref[...] += jnp.dot(sgs_ref[...].astype(xs_ref.dtype), xs_ref[...],
                            preferred_element_type=jnp.float32)


def _sgs_matmul_resident_kernel(sgs_ref, xs_ref, out_ref):
    """Grid = (B tiles,); xs kept VMEM-resident (constant index_map).

    sgs_ref : (TB, Np) int8
    xs_ref  : (Np, Dp) bf16
    out_ref : (TB, Dp) f32
    """
    out_ref[...] = jnp.dot(sgs_ref[...].astype(xs_ref.dtype), xs_ref[...],
                           preferred_element_type=jnp.float32)


# --------------------------------------------------------------------------
# Wrapper
# --------------------------------------------------------------------------
def hgnn_sg_attn(x, attn_vector, sgs, *, tb=None, tn=None,
                 sgs_ingest_dtype=jnp.int8, resident_x=None):
    """x: (N, vdim) f32, attn_vector: (vdim, 1) f32, sgs: (B, N) f32 (0/1).

    Returns (out: (B, vdim) f32, attn_wts: (B, N) f32).

    sgs_ingest_dtype=int8 is exact only for small-integer incidence matrices
    (the usual case); pass jnp.bfloat16/float32 otherwise.
    """
    x = x.astype(jnp.float32)
    N, D = x.shape
    B = sgs.shape[0]

    Dp = _round_up(D, 128)

    # N tile: multiple of 128 (lanes).
    if tn is None:
        TN = min(2048, _round_up(N, 128))
    else:
        TN = _round_up(tn, 128)
    Np = _round_up(N, TN)

    # B tile: align to the sgs sublane packing (int8 -> 32 rows, bf16 -> 16).
    row_align = 32 if jnp.dtype(sgs_ingest_dtype).itemsize == 1 else 16
    if tb is None:
        TB = min(512, _round_up(B, row_align))
        if B >= 2 * row_align:
            # keep >=2 B tiles so the "parallel" B axis can shard across the
            # two TensorCores on v7x.
            TB = min(TB, _round_up(-(-B // 2), row_align))
    else:
        TB = _round_up(tb, row_align)
    Bp = _round_up(B, TB)

    # Pad only when shapes are actually ragged.
    xp = x if (Np, Dp) == (N, D) else jnp.pad(x, ((0, Np - N), (0, Dp - D)))
    vp = attn_vector.reshape(1, D).astype(jnp.float32)
    if Dp != D:
        vp = jnp.pad(vp, ((0, 0), (0, Dp - D)))
    sgsp = sgs if (Bp, Np) == (B, N) else jnp.pad(sgs, ((0, Bp - B), (0, Np - N)))
    sgsp = sgsp.astype(sgs_ingest_dtype)

    # ---- prologue: attn column + scaled bf16 features (x read exactly once) ----
    xs, attn_col = pl.pallas_call(
        _scale_prologue_kernel,
        out_shape=(
            jax.ShapeDtypeStruct((Np, Dp), jnp.bfloat16),
            jax.ShapeDtypeStruct((Np, 1), jnp.float32),
        ),
        grid_spec=pltpu.PrefetchScalarGridSpec(
            num_scalar_prefetch=0,
            grid=(Np // TN,),
            in_specs=[
                pl.BlockSpec((TN, Dp), lambda n: (n, 0)),   # x tile
                pl.BlockSpec((1, Dp), lambda n: (0, 0)),    # attn vector
            ],
            out_specs=(
                pl.BlockSpec((TN, Dp), lambda n: (n, 0)),   # xs tile
                pl.BlockSpec((TN, 1), lambda n: (n, 0)),    # attn column
            ),
        ),
        compiler_params=pltpu.CompilerParams(
            dimension_semantics=("parallel",),
            vmem_limit_bytes=32 << 20,
        ),
    )(xp, vp)

    # ---- main matmul: choose resident-x (B-only grid) when xs fits VMEM ----
    itemsize = jnp.dtype(sgs_ingest_dtype).itemsize
    resident_bytes = (2 * Np * Dp * 2            # xs (possibly double-buffered)
                      + 2 * TB * Np * itemsize   # sgs tiles
                      + 2 * TB * Dp * 4)         # out tiles
    fits = resident_bytes <= (24 << 20)
    use_resident = fits if resident_x is None else (bool(resident_x) and fits)

    if use_resident:
        out_p = pl.pallas_call(
            _sgs_matmul_resident_kernel,
            out_shape=jax.ShapeDtypeStruct((Bp, Dp), jnp.float32),
            grid_spec=pltpu.PrefetchScalarGridSpec(
                num_scalar_prefetch=0,
                grid=(Bp // TB,),
                in_specs=[
                    pl.BlockSpec((TB, Np), lambda b: (b, 0)),   # sgs tile (int8)
                    pl.BlockSpec((Np, Dp), lambda b: (0, 0)),   # xs, resident
                ],
                out_specs=pl.BlockSpec((TB, Dp), lambda b: (b, 0)),
            ),
            compiler_params=pltpu.CompilerParams(
                dimension_semantics=("parallel",),
                vmem_limit_bytes=32 << 20,
            ),
        )(sgsp, xs)
    else:
        out_p = pl.pallas_call(
            _sgs_matmul_stream_kernel,
            out_shape=jax.ShapeDtypeStruct((Bp, Dp), jnp.float32),
            grid_spec=pltpu.PrefetchScalarGridSpec(
                num_scalar_prefetch=0,
                grid=(Bp // TB, Np // TN),
                in_specs=[
                    pl.BlockSpec((TB, TN), lambda b, n: (b, n)),   # sgs (int8)
                    pl.BlockSpec((TN, Dp), lambda b, n: (n, 0)),   # xs (bf16)
                ],
                out_specs=pl.BlockSpec((TB, Dp), lambda b, n: (b, 0)),
            ),
            compiler_params=pltpu.CompilerParams(
                dimension_semantics=("parallel", "arbitrary"),
                vmem_limit_bytes=32 << 20,
            ),
        )(sgsp, xs)

    out = out_p[:B, :D]
    attn_row = attn_col[:N, 0]                                   # (N,)
    # Lazy broadcast mirrors torch's .expand (a view, not a copy).
    attn_wts = jnp.broadcast_to(attn_row[None, :], (B, N))
    return out, attn_wts


if __name__ == "__main__":
    # Small shapes consistent with the module's sga step:
    #   N = number of nodes, D = sg_hid (= n_hid), B = number of subgraphs.
    N, D, B = 200, 48, 72

    key = jax.random.PRNGKey(0)
    kx, kv, ks = jax.random.split(key, 3)

    x = jax.random.normal(kx, (N, D), dtype=jnp.float32)

    # attn_vector ~ U(-stdv, stdv), stdv = 1/sqrt(D), shape (D, 1) (module init).
    stdv = 1.0 / math.sqrt(D)
    attn_vector = jax.random.uniform(kv, (D, 1), dtype=jnp.float32,
                                     minval=-stdv, maxval=stdv)

    # Binary subgraph incidence matrix (B, N).
    sgs = (jax.random.uniform(ks, (B, N)) > 0.5).astype(jnp.float32)

    # Pure-JAX f32 reference (HIGHEST precision so the reference itself is exact).
    attn_row_ref = jnp.einsum("nd,d->n", x, attn_vector[:, 0],
                              precision=lax.Precision.HIGHEST)
    attn_ref = jnp.broadcast_to(attn_row_ref[None, :], (B, N))
    out_ref = jnp.einsum("bn,nd->bd", sgs * attn_ref, x,
                         precision=lax.Precision.HIGHEST)

    # Exercise both the resident-x (B-only grid) and the streaming (B,N) grid
    # variants with a multi-tile configuration (tb=32 -> 3 B tiles, tn=128 ->
    # 2 N tiles with padding).
    for resident in (True, False):
        out, attn_wts = hgnn_sg_attn(x, attn_vector, sgs,
                                     tb=32, tn=128, resident_x=resident)
        out = jax.block_until_ready(out)
        attn_wts = jax.block_until_ready(attn_wts)

        assert jnp.allclose(attn_wts, attn_ref, atol=1e-5, rtol=1e-5), resident
        # xs is fed to the MXU in bf16 (f32 accumulation) -> relaxed tolerance.
        assert jnp.allclose(out, out_ref, atol=5e-2, rtol=2e-2), resident

    print("KERNEL_OK")
</pallas_src>

<mosaic_0001>
module attributes {stable_mosaic.version = 11 : i64} {
  func.func @_scale_prologue_kernel(%arg0: i32, %arg1: memref<128x128xf32, #tpu.memory_space<vmem>>, %arg2: memref<1x128xf32, #tpu.memory_space<vmem>>, %arg3: memref<128x128xbf16, #tpu.memory_space<vmem>>, %arg4: memref<128x1xf32, #tpu.memory_space<vmem>>) attributes {dimension_semantics = [#tpu.dimension_semantics<parallel>], iteration_bounds = array<i64: 2>, scalar_prefetch = 0 : i64, scratch_operands = 0 : i64, tpu.core_type = #tpu.core_type<tc>, window_params = [{transform_indices = @transform_0, window_bounds = array<i64: 128, 128>}, {pipeline_mode = #tpu.pipeline_mode<synchronous>, transform_indices = @transform_1, window_bounds = array<i64: 1, 128>}, {transform_indices = @transform_2, window_bounds = array<i64: 128, 128>}, {transform_indices = @transform_3, window_bounds = array<i64: 128, 1>}]} {
    %c0 = arith.constant 0 : index
    %c0_0 = arith.constant 0 : index
    %0 = vector.load %arg1[%c0, %c0_0] : memref<128x128xf32, #tpu.memory_space<vmem>>, vector<128x128xf32>
    %c0_1 = arith.constant 0 : index
    %c0_2 = arith.constant 0 : index
    %1 = vector.load %arg2[%c0_1, %c0_2] : memref<1x128xf32, #tpu.memory_space<vmem>>, vector<1x128xf32>
    %2 = vector.broadcast %1 : vector<1x128xf32> to vector<128x128xf32>
    %3 = arith.mulf %0, %2 : vector<128x128xf32>
    %cst = arith.constant dense<0.000000e+00> : vector<128xf32>
    %4 = vector.multi_reduction <add>, %3, %cst [1] : vector<128x128xf32> to vector<128xf32>
    %5 = vector.shape_cast %4 : vector<128xf32> to vector<128x1xf32>
    %c0_3 = arith.constant 0 : index
    %c0_4 = arith.constant 0 : index
    %6 = vector.load %arg4[%c0_3, %c0_4] : memref<128x1xf32, #tpu.memory_space<vmem>>, vector<128x1xf32>
    tpu.vector_store %arg4[%c0_3, %c0_4], %5 {strides = array<i32>} : memref<128x1xf32, #tpu.memory_space<vmem>>, vector<128x1xf32>,
    %7 = vector.broadcast %5 : vector<128x1xf32> to vector<128x128xf32>
    %8 = arith.mulf %0, %7 : vector<128x128xf32>
    %9 = arith.truncf %8 : vector<128x128xf32> to vector<128x128xbf16>
    %c0_5 = arith.constant 0 : index
    %c0_6 = arith.constant 0 : index
    %10 = vector.load %arg3[%c0_5, %c0_6] : memref<128x128xbf16, #tpu.memory_space<vmem>>, vector<128x128xbf16>
    tpu.vector_store %arg3[%c0_5, %c0_6], %9 {strides = array<i32>} : memref<128x128xbf16, #tpu.memory_space<vmem>>, vector<128x128xbf16>,
    return
  }
  func.func @transform_0(%arg0: i32) -> (i32, i32) {
    %c0_i32 = arith.constant 0 : i32
    %c0_i32_0 = arith.constant 0 : i32
    return %arg0, %c0_i32 : i32, i32
  }
  func.func @transform_1(%arg0: i32) -> (i32, i32) {
    %c0_i32 = arith.constant 0 : i32
    %c0_i32_0 = arith.constant 0 : i32
    %c0_i32_1 = arith.constant 0 : i32
    return %c0_i32, %c0_i32_0 : i32, i32
  }
  func.func @transform_2(%arg0: i32) -> (i32, i32) {
    %c0_i32 = arith.constant 0 : i32
    %c0_i32_0 = arith.constant 0 : i32
    return %arg0, %c0_i32 : i32, i32
  }
  func.func @transform_3(%arg0: i32) -> (i32, i32) {
    %c0_i32 = arith.constant 0 : i32
    %c0_i32_0 = arith.constant 0 : i32
    return %arg0, %c0_i32 : i32, i32
  }
}

</mosaic_0001>

<bundles_post_ra>
// kernel: tpu_custom_call.1
= control target key start
LH: loop header
LB: loop body
LE: loop exit
PB: predicated region body
PF: predicated region fallthrough
CT: control target
= control target key end

     0   :  { %9 = vsyncpa [#allocation3], 0  ;;  %s1063_s0 = inlined_call_operand.hbm [shape: f32[256,128], index: 0, kind: input, shape index: {}]   ;;  %s1064_s1 = inlined_call_operand.vmem [shape: f32[1,128], index: 1, kind: input, shape index: {}]   ;;  %s1065_s2 = inlined_call_operand.hbm [shape: bf16[256,128], index: 2, kind: output, shape index: {0}]   ;;  %s1066_s3 = inlined_call_operand.vmem [shape: f32[256,1], index: 3, kind: output, shape index: {1}]  }
   0x1   :  { %11 = vsyncpa [#allocation3 + $0x1], 0 }
   0x2   :  { %12 = vsyncpa [#allocation4], 0 }
   0x3   :  { %14 = vsyncpa [#allocation4 + $0x1], 0  ;;  %s782_s12 = smov 0   ;;  %s784_s13 = smov 0  }
   0x4   :  { %s786_s14 = smov 0   ;;  %s788_s15 = smov 0  }
   0x5 LB: > { %s803_s16 = sadd.s32 4294967295, %s754_s15   ;;  %s510_s17 = sadd.s32 4294967294, %s754_s15   ;;  %s754_s15 = sphi %s788_s15, %s1079_s15   ;;  %s750_s14 = sphi %s786_s14, %s1078_s14   ;;  %s746_s13 = sphi %s784_s13, %s1077_s13   ;;  %s742_s12 = sphi %s782_s12, %s1076_s12  }
   0x6   : > { %s807_s18 = sadd.s32 1, %s754_s15   ;;  %s27_s19 = sadd.s32 1, %s750_s14 }
   0x7   : > { %s24_s20 = ssub.s32 %s754_s15, %s807_s18  ;;  %p34_p0 = scmp.ne.s32.totalorder %s750_s14, %s746_s13 }
   0x8   : > { %p25_p1 = scmp.eq.s32.totalorder %s24_s20, 0  ;;  %p35_p2 = scmp.eq.s32.totalorder %s754_s15, 0 }
   0x9   : > { %p40_p3 = scmp.ne.s32.totalorder %s746_s13, %s742_s12  ;;  %p41_p4 = scmp.eq.s32.totalorder %s803_s16, 0 }
   0xa   : > { %s819_s21 = scalar_select %p25_p1, %s750_s14, %s27_s19  }
   0xb   : > { %p821_p5 = por %p35_p2, %p34_p0  ;;  %p825_p6 = por %p41_p4, %p40_p3 }
   0xc   : > { %p85_p7 = scmp.eq.s32.totalorder %s803_s16, 1  ;;  %p91_p8 = scmp.eq.s32.totalorder %s510_s17, 1 }
   0xd   : > { %p620_p10 = scmp.lt.s32.totalorder %s754_s15, 2  ;;  %s140_s26 = sand.u32 1, %s750_s14  }
   0xe   : > { %p832_p11 = por %p85_p7, %p34_p0  ;;  %p836_p12 = por %p91_p8, %p40_p3 }
   0xf   : > { %s543_s27 = sshll.u32 %s754_s15, 11  ;;  %s513_s28 = sshll.u32 %s140_s26, 7 }
  0x10   : > { %s1070_s24 = scalar_select %p832_p11, 1, 0 }
  0x11   : > { %s1071_s25 = scalar_select %p836_p12, 1, 0 }
  0x12   : > { %s845_s4 = scalar_lea.hbm %s1063_s0, %s543_s27  ;;  %s144_s5 = scalar_lea.vmem [#allocation2], %s513_s28 }
  0x13   : > { %s151_s6 = sshll.u32 %s144_s5, 4  ;;  %p849_p13 = pnand %p620_p10, %p821_p5  ;;  %s853_s6 = int_to_ptr.vmem [resolvable:$true] %s151_s6 }
  0x14   : > { %s855_s8 = scalar_lea.sflag [#allocation3], %s140_s26  ;;  %s658_s9 = scalar_lea.hbm %s845_s4, 2048 }
  0x15   : > { %p659_p0 = scmp.ne.s32.totalorder %s845_s4, %s658_s9  ;;  %p660_p1 = pneg %p849_p13 }
  0x16   : > { %s663_s17 = scalar_lea.hbm %s1063_s0, 4096  ;;  %p664_p4 = scmp.lt.u32.totalorder %s845_s4, %s1063_s0 }
  0x17   : > { %p661_p2 = pnand %p660_p1, %p659_p0  ;;  %p665_p5 = scmp.lt.u32.totalorder %s663_s17, %s658_s9 }
  0x18   : > { %p667_p8 = scmp.lt.u32.totalorder %s658_s9, %s845_s4 }
  0x19   : > { %p662_p3 = pneg %p661_p2  ;;  %p666_p7 = por %p665_p5, %p664_p4 }
  0x1b   : > { %p668_p10 = por %p667_p8, %p666_p7 }
  0x1d   : > { %p669_p9 = pnand %p668_p10, %p662_p3 }
  0x1f   : > { %672 = shalt.err (!%p669_p9)
}
  0x20   : > { %s673_s22 = scalar_lea.vmem %s853_s6, 2048  ;;  %s756_s26 = smov [#allocation2]  }
  0x21   : > { %p674_p0 = scmp.ne.s32.totalorder %s853_s6, %s673_s22  ;;  %s678_s27 = sshll.u32 %s756_s26, 4  ;;  %s679_s27 = int_to_ptr.vmem [resolvable:$false] %s678_s27 }
  0x22   : > { %s680_s28 = scalar_lea.vmem %s679_s27, 4096  ;;  %p681_p11 = scmp.lt.s32.totalorder %s853_s6, %s679_s27 }
  0x23   : > { %p676_p2 = pnand %p674_p0, %p660_p1  ;;  %p682_p4 = scmp.lt.s32.totalorder %s680_s28, %s673_s22 }
  0x25   : > { %p677_p12 = pneg %p676_p2  ;;  %p683_p5 = por %p682_p4, %p681_p11 }
  0x27   : > { %p684_p7 = pnand %p683_p5, %p677_p12 }
  0x29   : > { %687 = shalt.err (!%p684_p7)
}
  0x2a   : > { %s757_s29 = smov 128   ;;  %s758_s30 = smov 8  }
  0x2b   : > { %615 = dma.hbm_to_vmem [thread:$0]  (!%p849_p13), %s845_s4, 2048, %s853_s6, %s855_s8, %s757_s29, %s757_s29, %s758_s30  }
  0x2c   : > { %p516_p9 = scmp.ge.s32.totalorder %s754_s15, 1  ;;  %p159_p1 = scmp.lt.s32.totalorder %s754_s15, 3 }
  0x2e   : > { %p160_p3 = pnand %p516_p9, %p159_p1 }
  0x2f   : > { %s886_s5 = sand.u32 (!%p160_p3), 1, %s746_s13  }
  0x30   : > { %163 = sbr.rel (%p160_p3) target bundleno = 249 (0xf9), region = 28  ;;  %s517_s9 = sshll.u32 (!%p160_p3), %s886_s5, 7 }
  0x31   : > { %s166_s10 = scalar_lea.sflag (!%p160_p3), [#allocation3], %s886_s5  ;;  %s890_s11 = scalar_lea.vmem (!%p160_p3), [#allocation2], %s517_s9 }
  0x37   : > { %733 = dma.done.wait (%p825_p6), %s166_s10, 2048  }
  0x38   : > { %735 = vsyncadd (%p825_p6), %s166_s10, 4294965248  ;;  %v207_v0 = vld [vmem:[%s890_s11 + $0x10] sm:$0xff]  ;;  %v521_v1 = vld [vmem:[%s1064_s1] ss:$0 sm:$0xff]  ;;  %s519_s23 = sshll.u32 %s803_s16, 4  ;;  %vm276_vm0 = vcmask 7168  }
  0x39   : > { %v205_v2 = vld [vmem:[%s890_s11] sm:$0xff]  ;;  %v230_v3 = vmul.f32 %v521_v1, %v207_v0  ;;  %v208_v5 = vld [vmem:[%s890_s11 + $0x18] sm:$0xff]  ;;  %v206_v6 = vld [vmem:[%s890_s11 + $0x8] sm:$0xff]  ;;  %p200_p6 = scmp.lt.s32.totalorder %s519_s23, 31  ;;  %s518_s20 = sshll.u32 %s886_s5, 6 }
  0x3a   : > { %v228_v4 = vmul.f32 %v521_v1, %v205_v2  ;;  %v231_v7 = vmul.f32 %v521_v1, %v208_v5  ;;  %v229_v8 = vmul.f32 %v521_v1, %v206_v6  ;;  %v904_v9 = vld [vmem:[%s890_s11 + $0x28] sm:$0xff]  ;;  %v907_v10 = vld [vmem:[%s890_s11 + $0x20] sm:$0xff]  ;;  %v912_v13 = vld [vmem:[%s890_s11 + $0x38] sm:$0xff]  ;;  %s966_s22 = scalar_lea.vmem [#allocation5], %s518_s20  ;;  %s560_s26 = sshll.u32 %s803_s16, 10 }
  0x3b   : > { %248 = vadd.xlane.f32.xlu1 %v230_v3  ;;  %v233_v11 = vmul.f32 %v521_v1, %v904_v9  ;;  %v232_v12 = vmul.f32 %v521_v1, %v907_v10  ;;  %v915_v14 = vld [vmem:[%s890_s11 + $0x30] sm:$0xff]  ;;  %v235_v15 = vmul.f32 %v521_v1, %v912_v13  ;;  %v920_v17 = vld [vmem:[%s890_s11 + $0x48] sm:$0xff]  ;;  %v923_v18 = vld [vmem:[%s890_s11 + $0x40] sm:$0xff]  ;;  %s1081_s23 = smov (!%p200_p6, %s519_s23), 31  ;;  %s408_s27 = sshll.u32 %s966_s22, 4  ;;  %s1018_s27 = int_to_ptr.vmem [resolvable:$true] %s408_s27 }
  0x3c   : > { %244 = vadd.xlane.f32.xlu0 %v228_v4  ;;  %v234_v16 = vmul.f32 %v521_v1, %v915_v14  ;;  %v237_v19 = vmul.f32 %v521_v1, %v920_v17  ;;  %v236_v20 = vmul.f32 %v521_v1, %v923_v18  ;;  %v928_v21 = vld [vmem:[%s890_s11 + $0x58] sm:$0xff]  ;;  %v931_v22 = vld [vmem:[%s890_s11 + $0x50] sm:$0xff]  ;;  %v936_v25 = vld [vmem:[%s890_s11 + $0x68] sm:$0xff]  ;;  %s520_s7 = sshll.u32 %s1081_s23, 3  ;;  %s1016_s30 = scalar_lea.hbm %s1065_s2, %s560_s26 }
  0x3d   : > { %v239_v23 = vmul.f32 %v521_v1, %v928_v21  ;;  %v238_v24 = vmul.f32 %v521_v1, %v931_v22  ;;  %v939_v26 = vld [vmem:[%s890_s11 + $0x60] sm:$0xff]  ;;  %v241_v27 = vmul.f32 %v521_v1, %v936_v25  ;;  %v944_v29 = vld [vmem:[%s890_s11 + $0x78] sm:$0xff]  ;;  %v947_v30 = vld [vmem:[%s890_s11 + $0x70] sm:$0xff]  ;;  %s955_s19 = scalar_lea.vmem %s1066_s3, %s520_s7  ;;  %s390_s16 = scalar_lea.sflag [#allocation4], %s886_s5 }
  0x3e   : > { %v240_v28 = vmul.f32 %v521_v1, %v939_v26  ;;  %v243_v31 = vmul.f32 %v521_v1, %v944_v29  ;;  %v242_v32 = vmul.f32 %v521_v1, %v947_v30  ;;  %s688_s9 = scalar_lea.vmem %s1018_s27, 1024  ;;  %p1073_p12 = scmp.ne.s32.totalorder %s1070_s24, 0 }
  0x3f   : > { %250 = vadd.xlane.f32.xlu1 %v231_v7  ;;  %p689_p11 = scmp.ne.s32.totalorder %s1018_s27, %s688_s9  ;;  %s759_s10 = smov [#allocation5]  }
  0x40   : > { %246 = vadd.xlane.f32.xlu0 %v229_v8  ;;  %s692_s11 = sshll.u32 %s759_s10, 4  ;;  %s693_s11 = int_to_ptr.vmem [resolvable:$false] %s692_s11 }
  0x41   : > { %p690_p13 = pnand %p689_p11, %p1073_p12  ;;  %s694_s4 = scalar_lea.vmem %s693_s11, 2048 }
  0x42   : > { %p695_p10 = scmp.lt.s32.totalorder %s1018_s27, %s693_s11  ;;  %p696_p0 = scmp.lt.s32.totalorder %s694_s4, %s688_s9 }
  0x43   : > { %254 = vadd.xlane.f32.xlu1 %v233_v11  ;;  %p691_p8 = pneg %p690_p13 }
  0x44   : > { %252 = vadd.xlane.f32.xlu0 %v232_v12  ;;  %p697_p2 = por %p696_p0, %p695_p10 }
  0x46   : > { %p698_p4 = pnand %p697_p2, %p691_p8 }
  0x47   : > { %258 = vadd.xlane.f32.xlu1 %v235_v15 }
  0x48   : > { %256 = vadd.xlane.f32.xlu0 %v234_v16 }
  0x4b   : > { %262 = vadd.xlane.f32.xlu1 %v237_v19 }
  0x4c   : > { %260 = vadd.xlane.f32.xlu0 %v236_v20 }
  0x4f   : > { %266 = vadd.xlane.f32.xlu1 %v239_v23 }
  0x50   : > { %264 = vadd.xlane.f32.xlu0 %v238_v24 }
  0x53   : > { %270 = vadd.xlane.f32.xlu1 %v241_v27 }
  0x54   : > { %268 = vadd.xlane.f32.xlu0 %v240_v28 }
  0x57   : > { %274 = vadd.xlane.f32.xlu1 %v243_v31 }
  0x58   : > { %272 = vadd.xlane.f32.xlu0 %v242_v32 }
  0xc8   : > { %v249_v33 = vpop.xlane.xlu1 %248 }
  0xc9   : > { %v245_v34 = vpop.xlane.xlu0 %244  ;;  %279 = vst.msk [vmem:[%s955_s19 + $0x10] sm:$0xff] %vm276_vm0, %v249_v33  ;;  %v295_v37 = vmul.f32 %v249_v33, %v207_v0 }
  0xca   : > { %277 = vst.msk [vmem:[%s955_s19] sm:$0xff] %vm276_vm0, %v245_v34  ;;  %v293_v38 = vmul.f32 %v245_v34, %v205_v2 }
  0xcc   : > { %v251_v35 = vpop.xlane.xlu1 %250 }
  0xcd   : > { %v247_v36 = vpop.xlane.xlu0 %246  ;;  %280 = vst.msk [vmem:[%s955_s19 + $0x18] sm:$0xff] %vm276_vm0, %v251_v35  ;;  %v296_v39 = vmul.f32 %v251_v35, %v208_v5 }
  0xce   : > { %278 = vst.msk [vmem:[%s955_s19 + $0x8] sm:$0xff] %vm276_vm0, %v247_v36  ;;  %v294_v40 = vmul.f32 %v247_v36, %v206_v6 }
  0xcf   : > { %v569_v41 = vpack.c.bf16 %v296_v39, %v295_v37 }
  0xd0   : > { %v564_v42 = vpack.c.bf16 %v294_v40, %v293_v38  ;;  %v255_v43 = vpop.xlane.xlu1 %254 }
  0xd1   : > { %v253_v44 = vpop.xlane.xlu0 %252  ;;  %601 = vst [vmem:[%s966_s22 + $0x8] sm:$0xff] %v569_v41   ;;  %282 = vst.msk [vmem:[%s955_s19 + $0x28] sm:$0xff] %vm276_vm0, %v255_v43  ;;  %v298_v45 = vmul.f32 %v255_v43, %v904_v9 }
  0xd2   : > { %565 = vst [vmem:[%s966_s22] sm:$0xff] %v564_v42   ;;  %281 = vst.msk [vmem:[%s955_s19 + $0x20] sm:$0xff] %vm276_vm0, %v253_v44  ;;  %v297_v46 = vmul.f32 %v253_v44, %v907_v10 }
  0xd4   : > { %v574_v47 = vpack.c.bf16 %v298_v45, %v297_v46  ;;  %v259_v48 = vpop.xlane.xlu1 %258 }
  0xd5   : > { %v257_v49 = vpop.xlane.xlu0 %256  ;;  %284 = vst.msk [vmem:[%s955_s19 + $0x38] sm:$0xff] %vm276_vm0, %v259_v48  ;;  %v300_v50 = vmul.f32 %v259_v48, %v912_v13 }
  0xd6   : > { %602 = vst [vmem:[%s966_s22 + $0x10] sm:$0xff] %v574_v47   ;;  %283 = vst.msk [vmem:[%s955_s19 + $0x30] sm:$0xff] %vm276_vm0, %v257_v49  ;;  %v299_v51 = vmul.f32 %v257_v49, %v915_v14 }
  0xd8   : > { %v579_v52 = vpack.c.bf16 %v300_v50, %v299_v51  ;;  %v263_v53 = vpop.xlane.xlu1 %262 }
  0xd9   : > { %v261_v54 = vpop.xlane.xlu0 %260  ;;  %286 = vst.msk [vmem:[%s955_s19 + $0x48] sm:$0xff] %vm276_vm0, %v263_v53  ;;  %v302_v55 = vmul.f32 %v263_v53, %v920_v17 }
  0xda   : > { %603 = vst [vmem:[%s966_s22 + $0x18] sm:$0xff] %v579_v52   ;;  %285 = vst.msk [vmem:[%s955_s19 + $0x40] sm:$0xff] %vm276_vm0, %v261_v54  ;;  %v301_v56 = vmul.f32 %v261_v54, %v923_v18 }
  0xdc   : > { %v584_v57 = vpack.c.bf16 %v302_v55, %v301_v56  ;;  %v267_v58 = vpop.xlane.xlu1 %266 }
  0xdd   : > { %v265_v59 = vpop.xlane.xlu0 %264  ;;  %288 = vst.msk [vmem:[%s955_s19 + $0x58] sm:$0xff] %vm276_vm0, %v267_v58  ;;  %v304_v60 = vmul.f32 %v267_v58, %v928_v21 }
  0xde   : > { %604 = vst [vmem:[%s966_s22 + $0x20] sm:$0xff] %v584_v57   ;;  %287 = vst.msk [vmem:[%s955_s19 + $0x50] sm:$0xff] %vm276_vm0, %v265_v59  ;;  %v303_v61 = vmul.f32 %v265_v59, %v931_v22 }
  0xe0   : > { %v589_v62 = vpack.c.bf16 %v304_v60, %v303_v61  ;;  %v271_v63 = vpop.xlane.xlu1 %270 }
  0xe1   : > { %v269_v0 = vpop.xlane.xlu0 %268  ;;  %290 = vst.msk [vmem:[%s955_s19 + $0x68] sm:$0xff] %vm276_vm0, %v271_v63  ;;  %v306_v1 = vmul.f32 %v271_v63, %v936_v25 }
  0xe2   : > { %605 = vst [vmem:[%s966_s22 + $0x28] sm:$0xff] %v589_v62   ;;  %289 = vst.msk [vmem:[%s955_s19 + $0x60] sm:$0xff] %vm276_vm0, %v269_v0  ;;  %v305_v2 = vmul.f32 %v269_v0, %v939_v26 }
  0xe4   : > { %v594_v3 = vpack.c.bf16 %v306_v1, %v305_v2  ;;  %v275_v4 = vpop.xlane.xlu1 %274 }
  0xe5   : > { %v273_v5 = vpop.xlane.xlu0 %272  ;;  %292 = vst.msk [vmem:[%s955_s19 + $0x78] sm:$0xff] %vm276_vm0, %v275_v4  ;;  %v308_v6 = vmul.f32 %v275_v4, %v944_v29 }
  0xe6   : > { %606 = vst [vmem:[%s966_s22 + $0x30] sm:$0xff] %v594_v3   ;;  %291 = vst.msk [vmem:[%s955_s19 + $0x70] sm:$0xff] %vm276_vm0, %v273_v5  ;;  %v307_v7 = vmul.f32 %v273_v5, %v947_v30 }
  0xe8   : > { %v599_v8 = vpack.c.bf16 %v308_v6, %v307_v7 }
  0xea   : > { %607 = vst [vmem:[%s966_s22 + $0x38] sm:$0xff] %v599_v8  }
  0xeb   : > { %701 = shalt.err (!%p698_p4)
}
  0xec   : > { %s702_s6 = scalar_lea.hbm %s1016_s30, 1024  ;;  %s706_s8 = scalar_lea.hbm %s1065_s2, 2048 }
  0xed   : > { %p703_p5 = scmp.ne.s32.totalorder %s1016_s30, %s702_s6  ;;  %p707_p1 = scmp.lt.u32.totalorder %s1016_s30, %s1065_s2 }
  0xee   : > { %p708_p3 = scmp.lt.u32.totalorder %s706_s8, %s702_s6  ;;  %p710_p11 = scmp.lt.u32.totalorder %s702_s6, %s1016_s30 }
  0xef   : > { %p704_p7 = pnand %p703_p5, %p1073_p12 }
  0xf0   : > { %p709_p6 = por %p708_p3, %p707_p1 }
  0xf1   : > { %p705_p9 = pneg %p704_p7 }
  0xf2   : > { %p711_p13 = por %p710_p11, %p709_p6 }
  0xf4   : > { %p712_p8 = pnand %p711_p13, %p705_p9 }
  0xf6   : > { %715 = shalt.err (!%p712_p8)
}
  0xf7   : > { %s760_s20 = smov 64   ;;  %s761_s22 = smov 4  }
  0xf8   : > { %610 = dma.vmem_to_hbm [thread:$0]  (%p1073_p12), %s1018_s27, 1024, %s1016_s30, %s390_s16, %s760_s20, %s760_s20, %s761_s22  }
  0xf9 PF: > { %s427_s26 = sand.u32 1, %s742_s12   ;;  %p1074_p10 = scmp.ne.s32.totalorder %s1071_s25, 0 }
  0xfa   : > { %p1075_p0 = scmp.ge.s32.totalorder %s754_s15, 2  ;;  %s428_s28 = scalar_lea.sflag [#allocation4], %s427_s26 }
  0xfc   : > { %p617_p2 = pnand %p1075_p0, %p1074_p10 }
  0xfe   : > { %737 = dma.done.wait (!%p617_p2), %s428_s28, 1024  }
  0xff   : > { %739 = vsyncadd (!%p617_p2), %s428_s28, 4294966272  ;;  %p17_p4 = scmp.ge.s32.totalorder %s807_s18, 4   ;;  %s1076_s12 = smov %s746_s13 }
 0x100   : > { %s1077_s13 = smov %s750_s14  ;;  %s1078_s14 = smov %s819_s21 }
 0x101   : > { %s1079_s15 = smov %s807_s18  ;;  %19 = sbr.rel (!%p17_p4) target bundleno = 5 (0x5), region = 85 }
 0x108   :  { %441 = vsyncpa [#allocation3], 1 }
 0x109   :  { %443 = vsyncpa [#allocation3 + $0x1], 1 }
 0x10a   :  { %444 = vsyncpa [#allocation4], 1 }
 0x10b   :  { %446 = vsyncpa [#allocation4 + $0x1], 1 }

</bundles_post_ra>
